<compile_context>
chip_gen: v7x
topology: tpu7x:2x2x1
jax: 0.10.0
libtpu: 0.0.40
codegen_flags: <defaults>
</compile_context>

<pallas_src>
import functools

import jax
import jax.numpy as jnp
from jax.experimental import pallas as pl
from jax.experimental.pallas import tpu as pltpu


# ---------------------------------------------------------------------------
# Fused SE kernel: squeeze -> fc1 -> relu -> fc2 -> sigmoid -> excite
# ---------------------------------------------------------------------------
def _se_kernel(x_ref, w1_ref, w2_ref, o_ref, *, inv_hw):
    # x_ref block: (1, HW, C)  -- one batch element, channels on the lane axis.
    x = x_ref[0].astype(jnp.float32)                         # (HW, C)

    # Squeeze: global average pool over spatial positions (sublane reduction).
    mean = jnp.sum(x, axis=0, keepdims=True) * inv_hw        # (1, C)

    # Excitation MLP (MXU matmuls with f32 accumulation).
    h = jnp.dot(mean, w1_ref[...], preferred_element_type=jnp.float32)  # (1, C//r)
    h = jnp.maximum(h, 0.0)                                              # ReLU
    z = jnp.dot(h, w2_ref[...], preferred_element_type=jnp.float32)     # (1, C)
    s = 1.0 / (1.0 + jnp.exp(-z))                                        # sigmoid

    # Excite: per-channel scale broadcast over all spatial positions.
    o_ref[0] = (x * s).astype(o_ref.dtype)


def se_layer(x_nchw, fc1_w, fc2_w):
    """SELayer forward.

    x_nchw : (B, C, H, W)  float32 (NCHW, matching the PyTorch module)
    fc1_w  : (C // r, C)   PyTorch nn.Linear weight (out_features, in_features), no bias
    fc2_w  : (C, C // r)   PyTorch nn.Linear weight, no bias
    returns: (B, C, H, W)
    """
    B, C, H, W = x_nchw.shape
    HW = H * W
    Cr = fc1_w.shape[0]

    # Channels-last so C maps onto the 128-lane axis (lane-dense loads/stores).
    x = jnp.transpose(x_nchw, (0, 2, 3, 1)).reshape(B, HW, C)
    w1 = jnp.transpose(fc1_w)   # (C, Cr):  y @ W1.T  ==  y @ w1
    w2 = jnp.transpose(fc2_w)   # (Cr, C)

    out = pl.pallas_call(
        functools.partial(_se_kernel, inv_hw=1.0 / HW),
        out_shape=jax.ShapeDtypeStruct((B, HW, C), x.dtype),
        grid=(B,),
        in_specs=[
            pl.BlockSpec((1, HW, C), lambda b: (b, 0, 0)),   # whole image per step
            pl.BlockSpec((C, Cr), lambda b: (0, 0)),         # tiny, constant weights
            pl.BlockSpec((Cr, C), lambda b: (0, 0)),
        ],
        out_specs=pl.BlockSpec((1, HW, C), lambda b: (b, 0, 0)),
        compiler_params=pltpu.CompilerParams(
            dimension_semantics=("parallel",),               # shard batch across TCs
            vmem_limit_bytes=64 * 1024 * 1024,
        ),
    )(x, w1, w2)

    return jnp.transpose(out.reshape(B, H, W, C), (0, 3, 1, 2))


# ---------------------------------------------------------------------------
# Demo / self-check
# ---------------------------------------------------------------------------
if __name__ == "__main__":
    # Small shapes consistent with the module: channel must be >= reduction (=16)
    # for the bottleneck Linear to be non-degenerate. C=128 is also lane-dense.
    B, C, H, W = 2, 128, 16, 16
    reduction = 16
    Cr = C // reduction

    key = jax.random.PRNGKey(0)
    kx, k1, k2 = jax.random.split(key, 3)
    x = jax.random.normal(kx, (B, C, H, W), jnp.float32)
    fc1_w = jax.random.normal(k1, (Cr, C), jnp.float32) * 0.1   # Linear(C, C//r).weight
    fc2_w = jax.random.normal(k2, (C, Cr), jnp.float32) * 0.1   # Linear(C//r, C).weight

    fwd = jax.jit(se_layer)
    out = jax.block_until_ready(fwd(x, fc1_w, fc2_w))

    # Pure-JAX reference of the PyTorch forward.
    y = jnp.mean(x, axis=(2, 3))                                           # (B, C)
    y = jnp.maximum(jnp.dot(y, fc1_w.T, precision=jax.lax.Precision.HIGHEST), 0.0)
    y = jax.nn.sigmoid(jnp.dot(y, fc2_w.T, precision=jax.lax.Precision.HIGHEST))
    ref = x * y[:, :, None, None]

    assert out.shape == x.shape, out.shape
    assert bool(jnp.all(jnp.isfinite(out)))
    max_err = float(jnp.max(jnp.abs(out - ref)))
    assert max_err < 1e-3, max_err
    print("KERNEL_OK")
</pallas_src>

<mosaic_0001>
module attributes {stable_mosaic.version = 11 : i64} {
  func.func @_se_kernel(%arg0: i32, %arg1: memref<1x256x128xf32, #tpu.memory_space<vmem>>, %arg2: memref<128x8xf32, #tpu.memory_space<vmem>>, %arg3: memref<8x128xf32, #tpu.memory_space<vmem>>, %arg4: memref<1x256x128xf32, #tpu.memory_space<vmem>>) attributes {dimension_semantics = [#tpu.dimension_semantics<parallel>], iteration_bounds = array<i64: 2>, scalar_prefetch = 0 : i64, scratch_operands = 0 : i64, tpu.core_type = #tpu.core_type<tc>, window_params = [{transform_indices = @transform_0, window_bounds = array<i64: 1, 256, 128>}, {pipeline_mode = #tpu.pipeline_mode<synchronous>, transform_indices = @transform_1, window_bounds = array<i64: 128, 8>}, {pipeline_mode = #tpu.pipeline_mode<synchronous>, transform_indices = @transform_2, window_bounds = array<i64: 8, 128>}, {transform_indices = @transform_3, window_bounds = array<i64: 1, 256, 128>}]} {
    %c0 = arith.constant 0 : index
    %c0_0 = arith.constant 0 : index
    %c0_1 = arith.constant 0 : index
    %0 = vector.load %arg1[%c0, %c0_0, %c0_1] : memref<1x256x128xf32, #tpu.memory_space<vmem>>, vector<1x256x128xf32>
    %1 = vector.shape_cast %0 : vector<1x256x128xf32> to vector<256x128xf32>
    %cst = arith.constant dense<0.000000e+00> : vector<128xf32>
    %2 = vector.multi_reduction <add>, %1, %cst [0] : vector<256x128xf32> to vector<128xf32>
    %3 = vector.shape_cast %2 : vector<128xf32> to vector<1x128xf32>
    %cst_2 = arith.constant 3.906250e-03 : f32
    %4 = vector.broadcast %cst_2 : f32 to vector<1x128xf32>
    %5 = arith.mulf %3, %4 : vector<1x128xf32>
    %c0_3 = arith.constant 0 : index
    %c0_4 = arith.constant 0 : index
    %6 = vector.load %arg2[%c0_3, %c0_4] : memref<128x8xf32, #tpu.memory_space<vmem>>, vector<128x8xf32>
    %cst_5 = arith.constant dense<0.000000e+00> : vector<1x8xf32>
    %7 = tpu.matmul %5, %6, %cst_5 {dimension_numbers = #tpu.dot_dimension_numbers<[1], [0], [0], [1], [0, 0, 1, 1], [], []>} : vector<1x128xf32>, vector<128x8xf32>, vector<1x8xf32> -> vector<1x8xf32>
    %cst_6 = arith.constant 0.000000e+00 : f32
    %8 = vector.broadcast %cst_6 : f32 to vector<1x8xf32>
    %9 = arith.maximumf %7, %8 : vector<1x8xf32>
    %c0_7 = arith.constant 0 : index
    %c0_8 = arith.constant 0 : index
    %10 = vector.load %arg3[%c0_7, %c0_8] : memref<8x128xf32, #tpu.memory_space<vmem>>, vector<8x128xf32>
    %cst_9 = arith.constant dense<0.000000e+00> : vector<1x128xf32>
    %11 = tpu.matmul %9, %10, %cst_9 {dimension_numbers = #tpu.dot_dimension_numbers<[1], [0], [0], [1], [0, 0, 1, 1], [], []>} : vector<1x8xf32>, vector<8x128xf32>, vector<1x128xf32> -> vector<1x128xf32>
    %cst_10 = arith.constant 0.000000e+00 : f32
    %12 = vector.broadcast %cst_10 : f32 to vector<1x128xf32>
    %13 = arith.subf %12, %11 : vector<1x128xf32>
    %14 = math.exp %13 : vector<1x128xf32>
    %cst_11 = arith.constant 1.000000e+00 : f32
    %15 = vector.broadcast %cst_11 : f32 to vector<1x128xf32>
    %16 = arith.addf %15, %14 : vector<1x128xf32>
    %cst_12 = arith.constant 1.000000e+00 : f32
    %17 = vector.broadcast %cst_12 : f32 to vector<1x128xf32>
    %18 = arith.divf %17, %16 : vector<1x128xf32>
    %19 = vector.broadcast %18 : vector<1x128xf32> to vector<256x128xf32>
    %20 = arith.mulf %1, %19 : vector<256x128xf32>
    %c0_13 = arith.constant 0 : index
    %c0_14 = arith.constant 0 : index
    %c0_15 = arith.constant 0 : index
    %21 = vector.load %arg4[%c0_13, %c0_14, %c0_15] : memref<1x256x128xf32, #tpu.memory_space<vmem>>, vector<1x256x128xf32>
    %22 = vector.shape_cast %21 : vector<1x256x128xf32> to vector<256x128xf32>
    %23 = vector.shape_cast %20 : vector<256x128xf32> to vector<1x256x128xf32>
    tpu.vector_store %arg4[%c0_13, %c0_14, %c0_15], %23 {strides = array<i32>} : memref<1x256x128xf32, #tpu.memory_space<vmem>>, vector<1x256x128xf32>,
    return
  }
  func.func @transform_0(%arg0: i32) -> (i32, i32, i32) {
    %c0_i32 = arith.constant 0 : i32
    %c0_i32_0 = arith.constant 0 : i32
    %c0_i32_1 = arith.constant 0 : i32
    return %arg0, %c0_i32, %c0_i32_0 : i32, i32, i32
  }
  func.func @transform_1(%arg0: i32) -> (i32, i32) {
    %c0_i32 = arith.constant 0 : i32
    %c0_i32_0 = arith.constant 0 : i32
    %c0_i32_1 = arith.constant 0 : i32
    return %c0_i32, %c0_i32_0 : i32, i32
  }
  func.func @transform_2(%arg0: i32) -> (i32, i32) {
    %c0_i32 = arith.constant 0 : i32
    %c0_i32_0 = arith.constant 0 : i32
    %c0_i32_1 = arith.constant 0 : i32
    return %c0_i32, %c0_i32_0 : i32, i32
  }
  func.func @transform_3(%arg0: i32) -> (i32, i32, i32) {
    %c0_i32 = arith.constant 0 : i32
    %c0_i32_0 = arith.constant 0 : i32
    %c0_i32_1 = arith.constant 0 : i32
    return %arg0, %c0_i32, %c0_i32_0 : i32, i32, i32
  }
}

</mosaic_0001>

<bundles_post_ra>
// kernel: se_layer.1
= control target key start
LH: loop header
LB: loop body
LE: loop exit
PB: predicated region body
PF: predicated region fallthrough
CT: control target
= control target key end

     0   :  { %8 = vsyncpa [#allocation3], 0  ;;  %s1448_s0 = inlined_call_operand.hbm [shape: f32[2,256,128], index: 0, kind: input, shape index: {}]   ;;  %s1449_s1 = inlined_call_operand.hbm [shape: f32[128,8], index: 1, kind: input, shape index: {}]   ;;  %s1450_s2 = inlined_call_operand.hbm [shape: f32[8,128], index: 2, kind: input, shape index: {}]   ;;  %s1451_s3 = inlined_call_operand.hbm [shape: f32[2,256,128], index: 3, kind: output, shape index: {}]  }
   0x1   :  { %10 = vsyncpa [#allocation3 + $0x1], 0 }
   0x2   :  { %11 = vsyncpa [#allocation6], 0 }
   0x3   :  { %12 = vsyncpa [#allocation4], 0 }
   0x4   :  { %14 = vsyncpa [#allocation4 + $0x1], 0  ;;  %s999_s12 = smov 0   ;;  %s1001_s13 = smov 0  }
   0x5   :  { %s1003_s14 = smov 0   ;;  %s1005_s15 = smov 0  }
   0x6 LB: > { %s1020_s16 = sadd.s32 4294967295, %s966_s15   ;;  %s628_s17 = sadd.s32 4294967294, %s966_s15   ;;  %s966_s15 = sphi %s1005_s15, %s1471_s15   ;;  %s962_s14 = sphi %s1003_s14, %s1470_s14   ;;  %s958_s13 = sphi %s1001_s13, %s1469_s13   ;;  %s954_s12 = sphi %s999_s12, %s1468_s12  }
   0x7   : > { %p40_p0 = scmp.ne.s32.totalorder %s958_s13, %s954_s12  ;;  %p1452_p1 = scmp.eq.s32.totalorder %s1020_s16, 0 }
   0x8   : > { %p112_p3 = scmp.eq.s32.totalorder %s628_s17, 1  ;;  %p629_p5 = scmp.ge.s32.totalorder %s966_s15, 1 }
   0x9   : > { %p1029_p4 = por %p1452_p1, %p40_p0  ;;  %p119_p7 = scmp.lt.s32.totalorder %s966_s15, 3 }
   0xa   : > { %p1034_p6 = por %p112_p3, %p40_p0  ;;  %s968_s21 = smov [#allocation5]  }
   0xb   : > { %s1455_s18 = scalar_select %p1029_p4, 1, 0 }
   0xc   : > { %s1456_s19 = scalar_select %p1034_p6, 1, 0 }
   0xd   : > { %p1039_p8 = pnand %p629_p5, %p119_p7  ;;  %s131_s22 = sshll.u32 %s968_s21, 4  ;;  %s1043_s22 = int_to_ptr.vmem [resolvable:$true] %s131_s22 }
   0xe   : > { %s969_s24 = smov [#allocation7]   ;;  %s810_s28 = scalar_lea.hbm %s1449_s1, 2048 }
   0xf   : > { %p744_p9 = pneg %p1039_p8  ;;  %s145_s25 = sshll.u32 %s969_s24, 4  ;;  %s1054_s25 = int_to_ptr.vmem [resolvable:$true] %s145_s25 }
  0x10   : > { %p811_p12 = scmp.ne.s32.totalorder %s1449_s1, %s810_s28  ;;  %p817_p5 = scmp.lt.u32.totalorder %s810_s28, %s1449_s1 }
  0x11   : > { %p1050_p11 = pnand %p744_p9, %p1452_p1 }
  0x13   : > { %p812_p13 = pneg %p1050_p11 }
  0x15   : > { %p813_p0 = pnand %p812_p13, %p811_p12 }
  0x17   : > { %p814_p3 = pneg %p813_p0 }
  0x19   : > { %p819_p7 = pnand %p817_p5, %p814_p3 }
  0x1b   : > { %822 = shalt.err (!%p819_p7)
}
  0x1c   : > { %s823_s6 = scalar_lea.vmem %s1043_s22, 2048  ;;  %p831_p2 = scmp.lt.s32.totalorder %s1043_s22, %s1043_s22 }
  0x1d   : > { %p824_p9 = scmp.ne.s32.totalorder %s1043_s22, %s823_s6  ;;  %p832_p12 = scmp.lt.s32.totalorder %s823_s6, %s823_s6 }
  0x1f   : > { %p826_p10 = pnand %p824_p9, %p812_p13  ;;  %p833_p0 = por %p832_p12, %p831_p2 }
  0x21   : > { %p827_p1 = pneg %p826_p10 }
  0x23   : > { %p834_p6 = pnand %p833_p0, %p827_p1 }
  0x25   : > { %837 = shalt.err (!%p834_p6)
}
  0x26   : > { %s970_s7 = smov 128   ;;  %s971_s8 = smov 8  }
  0x27   : > { %747 = dma.hbm_to_vmem [thread:$0]  (!%p1050_p11), %s1449_s1, 2048, %s1043_s22, [#allocation6], %s970_s7, %s970_s7, %s971_s8  }
  0x28   : > { %s838_s21 = scalar_lea.hbm %s1450_s2, 128 }
  0x29   : > { %p839_p1 = scmp.ne.s32.totalorder %s1450_s2, %s838_s21  ;;  %p845_p10 = scmp.lt.u32.totalorder %s838_s21, %s1450_s2 }
  0x2b   : > { %p841_p2 = pnand %p839_p1, %p812_p13 }
  0x2d   : > { %p842_p6 = pneg %p841_p2 }
  0x2f   : > { %p847_p3 = pnand %p845_p10, %p842_p6 }
  0x31   : > { %850 = shalt.err (!%p847_p3)
}
  0x32   : > { %s851_s22 = scalar_lea.vmem %s1054_s25, 128  ;;  %p859_p12 = scmp.lt.s32.totalorder %s1054_s25, %s1054_s25 }
  0x33   : > { %p852_p5 = scmp.ne.s32.totalorder %s1054_s25, %s851_s22  ;;  %p860_p0 = scmp.lt.s32.totalorder %s851_s22, %s851_s22 }
  0x35   : > { %p854_p7 = pnand %p852_p5, %p812_p13  ;;  %p861_p1 = por %p860_p0, %p859_p12 }
  0x37   : > { %p855_p9 = pneg %p854_p7 }
  0x39   : > { %p862_p2 = pnand %p861_p1, %p855_p9 }
  0x3b   : > { %865 = shalt.err (!%p862_p2)
}
  0x3c   : > { %750 = dma.hbm_to_vmem [thread:$0]  (!%p1050_p11), %s1450_s2, 128, %s1054_s25, [#allocation6]  }
  0x3d   : > { %s1112_s4 = sadd.s32 1, %s966_s15   ;;  %s27_s23 = sadd.s32 1, %s962_s14 }
  0x3e   : > { %s24_s5 = ssub.s32 %s966_s15, %s1112_s4  ;;  %p34_p13 = scmp.ne.s32.totalorder %s962_s14, %s958_s13 }
  0x3f   : > { %p25_p6 = scmp.eq.s32.totalorder %s24_s5, 0  ;;  %p35_p10 = scmp.eq.s32.totalorder %s966_s15, 0 }
  0x40   : > { %p1459_p3 = scmp.eq.s32.totalorder %s1020_s16, 1  ;;  %p761_p7 = scmp.lt.s32.totalorder %s966_s15, 2 }
  0x41   : > { %s1128_s9 = scalar_select %p25_p6, %s962_s14, %s27_s23  }
  0x42   : > { %p1122_p5 = por %p1459_p3, %p34_p13  ;;  %p36_p9 = por %p35_p10, %p34_p13 }
  0x43   : > { %s156_s10 = sand.u32 1, %s962_s14   ;;  %s647_s25 = sshll.u32 %s966_s15, 12 }
  0x44   : > { %s1460_s6 = scalar_select %p1122_p5, 1, 0 }
  0x45   : > { %s633_s11 = sshll.u32 %s156_s10, 8  ;;  %s1135_s24 = scalar_lea.hbm %s1448_s0, %s647_s25 }
  0x46   : > { %s160_s26 = scalar_lea.vmem [#allocation2], %s633_s11  ;;  %p1139_p11 = pnand %p761_p7, %p36_p9 }
  0x47   : > { %s167_s27 = sshll.u32 %s160_s26, 4  ;;  %s1143_s22 = scalar_lea.sflag [#allocation3], %s156_s10  ;;  %s1137_s27 = int_to_ptr.vmem [resolvable:$true] %s167_s27 }
  0x48   : > { %s866_s29 = scalar_lea.hbm %s1135_s24, 4096  ;;  %p868_p0 = pneg %p1139_p11 }
  0x49   : > { %p867_p12 = scmp.ne.s32.totalorder %s1135_s24, %s866_s29  ;;  %s871_s5 = scalar_lea.hbm %s1448_s0, 8192 }
  0x4a   : > { %p872_p13 = scmp.lt.u32.totalorder %s1135_s24, %s1448_s0  ;;  %p873_p6 = scmp.lt.u32.totalorder %s871_s5, %s866_s29 }
  0x4b   : > { %p869_p1 = pnand %p868_p0, %p867_p12  ;;  %p875_p3 = scmp.lt.u32.totalorder %s866_s29, %s1135_s24 }
  0x4c   : > { %p874_p10 = por %p873_p6, %p872_p13 }
  0x4d   : > { %p870_p2 = pneg %p869_p1 }
  0x4e   : > { %p876_p7 = por %p875_p3, %p874_p10 }
  0x50   : > { %p877_p9 = pnand %p876_p7, %p870_p2 }
  0x52   : > { %880 = shalt.err (!%p877_p9)
}
  0x53   : > { %s881_s10 = scalar_lea.vmem %s1137_s27, 4096  ;;  %s972_s17 = smov [#allocation2]  }
  0x54   : > { %p882_p12 = scmp.ne.s32.totalorder %s1137_s27, %s881_s10  ;;  %s886_s21 = sshll.u32 %s972_s17, 4  ;;  %s887_s21 = int_to_ptr.vmem [resolvable:$false] %s886_s21 }
  0x55   : > { %s888_s26 = scalar_lea.vmem %s887_s21, 8192  ;;  %p889_p4 = scmp.lt.s32.totalorder %s1137_s27, %s887_s21 }
  0x56   : > { %p884_p1 = pnand %p882_p12, %p868_p0  ;;  %p890_p13 = scmp.lt.s32.totalorder %s888_s26, %s881_s10 }
  0x58   : > { %p885_p5 = pneg %p884_p1  ;;  %p891_p6 = por %p890_p13, %p889_p4 }
  0x5a   : > { %p892_p10 = pnand %p891_p6, %p885_p5 }
  0x5c   : > { %895 = shalt.err (!%p892_p10)
}
  0x5d   : > { %754 = dma.hbm_to_vmem [thread:$0]  (!%p1139_p11), %s1135_s24, 4096, %s1137_s27, %s1143_s22, %s970_s7, %s970_s7, %s971_s8  }
  0x5e   : > { %179 = sbr.rel (%p1039_p8) target bundleno = 674 (0x2a2), region = 32  ;;  %s1177_s29 = sand.u32 (!%p1039_p8), 1, %s958_s13  }
  0x5f   : > { %s637_s30 = sshll.u32 (!%p1039_p8), %s1177_s29, 8  ;;  %s182_s23 = scalar_lea.sflag (!%p1039_p8), [#allocation3], %s1177_s29 }
  0x60   : > { %s1183_s28 = scalar_lea.vmem (!%p1039_p8), [#allocation2], %s637_s30  ;;  %p1462_p4 = scmp.ne.s32.totalorder (!%p1039_p8), %s1455_s18, 0 }
  0x65   : > { %941 = dma.done.wait (%p1462_p4), %s182_s23, 4096  }
  0x66   : > { %943 = vsyncadd (%p1462_p4), %s182_s23, 4294963200  ;;  %p1463_p5 = scmp.eq.s32.totalorder %s1020_s16, 0 }
  0x68   : > { %945 = dma.done.wait (%p1463_p5), [#allocation6], 2176   ;;  %p1464_p8 = pmov %p1463_p5 }
  0x69   : > { %v973_v0 = vmov 0.0|0.0   ;;  %vm974_vm0 = vmmov 0   ;;  %v975_v1 = vmov 0.0   ;;  %v286_v2 = vld [vmem:[#allocation5] sm:$0xff]  ;;  %v287_v3 = vld [vmem:[#allocation5 + $0x8] sm:$0xff]  ;;  %v288_v4 = vld [vmem:[#allocation5 + $0x10] sm:$0xff] }
  0x6a   : > { %947 = vsyncadd (%p1464_p8), [#allocation6], 4294965120  ;;  %708 = vmatprep.subr.bf16.mxu0 %v973_v0  ;;  %700 = vmatprep.mubr.msk.f32.mxu0 %vm974_vm0, %v975_v1  ;;  %v709_v5 = vpack.c.bf16 %v287_v3, %v286_v2  ;;  %v289_v6 = vld [vmem:[#allocation5 + $0x18] sm:$0xff]  ;;  %v290_v8 = vld [vmem:[#allocation5 + $0x20] sm:$0xff]  ;;  %vm374_vm1 = vcmask 64512   ;;  %s1343_s18 = scalar_lea.vmem [#allocation8], %s637_s30 }
  0x6b   : > { %703 = vmatprep.subr.mxu1 %v975_v1  ;;  %705 = vmatprep.mubr.msk.f32.mxu1 %vm974_vm0, %v975_v1  ;;  %v712_v7 = vpack.c.bf16 %v289_v6, %v288_v4  ;;  %v291_v9 = vld [vmem:[#allocation5 + $0x28] sm:$0xff]  ;;  %v1196_v10 = vld [vmem:[%s1183_s28] sm:$0xff]  ;;  %v1202_v12 = vld [vmem:[%s1183_s28 + $0x10] sm:$0xff]  ;;  %s648_s20 = sshll.u32 %s1020_s16, 12  ;;  %s536_s7 = sshll.u32 %s1343_s18, 4  ;;  %s1388_s7 = int_to_ptr.vmem [resolvable:$true] %s536_s7 }
  0x6c   : > { %710 = vmatpush3.bf16.msra.mxu0 %v709_v5  ;;  %v1199_v11 = vld [vmem:[%s1183_s28 + $0x8] sm:$0xff]  ;;  %v715_v14 = vpack.c.bf16 %v291_v9, %v290_v8  ;;  %v1207_v15 = vld [vmem:[%s1183_s28 + $0x18] sm:$0xff]  ;;  %v292_v16 = vld [vmem:[#allocation5 + $0x30] sm:$0xff]  ;;  %s1386_s24 = scalar_lea.hbm %s1451_s3, %s648_s20  ;;  %s523_s27 = scalar_lea.sflag [#allocation4], %s1177_s29 }
  0x6d   : > { %711 = vmatprep.subr.bf16.mxu0 %v973_v0  ;;  %v248_v13 = vadd.f32 %v1199_v11, %v1196_v10  ;;  %v293_v17 = vld [vmem:[#allocation5 + $0x38] sm:$0xff]  ;;  %v1212_v19 = vld [vmem:[%s1183_s28 + $0x20] sm:$0xff]  ;;  %v1216_v22 = vld [vmem:[%s1183_s28 + $0x28] sm:$0xff]  ;;  %s896_s22 = scalar_lea.vmem %s1388_s7, 4096  ;;  %p1465_p0 = scmp.ne.s32.totalorder %s1460_s6, 0 }
  0x6e   : > { %v718_v21 = vpack.c.bf16 %v293_v17, %v292_v16  ;;  %v294_v23 = vld [vmem:[#allocation5 + $0x40] sm:$0xff]  ;;  %v295_v24 = vld [vmem:[#allocation5 + $0x48] sm:$0xff]  ;;  %v1221_v26 = vld [vmem:[%s1183_s28 + $0x30] sm:$0xff]  ;;  %p897_p11 = scmp.ne.s32.totalorder %s1388_s7, %s896_s22  ;;  %s976_s5 = smov [#allocation8]  }
  0x6f   : > { %v249_v18 = vadd.f32 %v248_v13, %v1202_v12  ;;  %v721_v28 = vpack.c.bf16 %v295_v24, %v294_v23  ;;  %v1225_v29 = vld [vmem:[%s1183_s28 + $0x38] sm:$0xff]  ;;  %v296_v30 = vld [vmem:[#allocation5 + $0x50] sm:$0xff]  ;;  %v1230_v33 = vld [vmem:[%s1183_s28 + $0x40] sm:$0xff]  ;;  %s900_s11 = sshll.u32 %s976_s5, 4  ;;  %s901_s11 = int_to_ptr.vmem [resolvable:$false] %s900_s11 }
  0x70   : > { %713 = vmatpush3.bf16.msra.mxu0 %v712_v7  ;;  %v297_v31 = vld [vmem:[#allocation5 + $0x58] sm:$0xff]  ;;  %v1234_v36 = vld [vmem:[%s1183_s28 + $0x48] sm:$0xff]  ;;  %v298_v37 = vld [vmem:[#allocation5 + $0x60] sm:$0xff]  ;;  %p898_p2 = pnand %p897_p11, %p1465_p0  ;;  %s902_s25 = scalar_lea.vmem %s901_s11, 8192 }
  0x71   : > { %714 = vmatprep.subr.bf16.mxu0 %v973_v0  ;;  %v250_v20 = vadd.f32 %v249_v18, %v1207_v15  ;;  %v724_v35 = vpack.c.bf16 %v297_v31, %v296_v30  ;;  %v299_v38 = vld [vmem:[#allocation5 + $0x68] sm:$0xff]  ;;  %v1239_v40 = vld [vmem:[%s1183_s28 + $0x50] sm:$0xff]  ;;  %v1243_v43 = vld [vmem:[%s1183_s28 + $0x58] sm:$0xff]  ;;  %p903_p7 = scmp.lt.s32.totalorder %s1388_s7, %s901_s11  ;;  %p904_p9 = scmp.lt.s32.totalorder %s902_s25, %s896_s22 }
  0x72   : > { %v727_v42 = vpack.c.bf16 %v299_v38, %v298_v37  ;;  %v300_v44 = vld [vmem:[#allocation5 + $0x70] sm:$0xff]  ;;  %v301_v45 = vld [vmem:[#allocation5 + $0x78] sm:$0xff]  ;;  %v1248_v47 = vld [vmem:[%s1183_s28 + $0x60] sm:$0xff]  ;;  %p899_p3 = pneg %p898_p2 }
  0x73   : > { %v251_v25 = vadd.f32 %v250_v20, %v1212_v19  ;;  %v730_v49 = vpack.c.bf16 %v301_v45, %v300_v44  ;;  %v1252_v50 = vld [vmem:[%s1183_s28 + $0x68] sm:$0xff]  ;;  %v1257_v52 = vld [vmem:[%s1183_s28 + $0x70] sm:$0xff]  ;;  %v1261_v54 = vld [vmem:[%s1183_s28 + $0x78] sm:$0xff]  ;;  %p905_p12 = por %p904_p9, %p903_p7 }
  0x74   : > { %716 = vmatpush3.bf16.msra.mxu0 %v715_v14  ;;  %v1265_v56 = vld [vmem:[%s1183_s28 + $0x80] sm:$0xff]  ;;  %v1269_v58 = vld [vmem:[%s1183_s28 + $0x88] sm:$0xff]  ;;  %v1273_v60 = vld [vmem:[%s1183_s28 + $0x90] sm:$0xff] }
  0x75   : > { %717 = vmatprep.subr.bf16.mxu0 %v973_v0  ;;  %v252_v27 = vadd.f32 %v251_v25, %v1216_v22  ;;  %v1277_v62 = vld [vmem:[%s1183_s28 + $0x98] sm:$0xff]  ;;  %v1285_v2 = vld [vmem:[%s1183_s28 + $0xa8] sm:$0xff]  ;;  %v1289_v4 = vld [vmem:[%s1183_s28 + $0xb0] sm:$0xff]  ;;  %p906_p1 = pnand %p905_p12, %p899_p3 }
  0x76   : > { %v1293_v6 = vld [vmem:[%s1183_s28 + $0xb8] sm:$0xff]  ;;  %v1297_v8 = vld [vmem:[%s1183_s28 + $0xc0] sm:$0xff]  ;;  %v1301_v13 = vld [vmem:[%s1183_s28 + $0xc8] sm:$0xff] }
  0x77   : > { %v253_v32 = vadd.f32 %v252_v27, %v1221_v26  ;;  %v1305_v16 = vld [vmem:[%s1183_s28 + $0xd0] sm:$0xff]  ;;  %v1309_v18 = vld [vmem:[%s1183_s28 + $0xd8] sm:$0xff]  ;;  %v1317_v24 = vld [vmem:[%s1183_s28 + $0xe8] sm:$0xff] }
  0x78   : > { %719 = vmatpush3.bf16.msra.mxu0 %v718_v21  ;;  %v1313_v21 = vld [vmem:[%s1183_s28 + $0xe0] sm:$0xff]  ;;  %v1321_v27 = vld [vmem:[%s1183_s28 + $0xf0] sm:$0xff]  ;;  %v1325_v30 = vld [vmem:[%s1183_s28 + $0xf8] sm:$0xff] }
  0x79   : > { %720 = vmatprep.subr.bf16.mxu0 %v973_v0  ;;  %v254_v34 = vadd.f32 %v253_v32, %v1225_v29  ;;  %v373_v44 = vld [vmem:[#allocation7] sm:$0xff] }
  0x7a   : > { %704 = vmatpush3.msra.mxu1 %v373_v44 }
  0x7b   : > { %v255_v39 = vadd.f32 %v254_v34, %v1230_v33 }
  0x7c   : > { %722 = vmatpush3.bf16.msra.mxu0 %v721_v28 }
  0x7d   : > { %723 = vmatprep.subr.bf16.mxu0 %v973_v0  ;;  %v256_v41 = vadd.f32 %v255_v39, %v1234_v36 }
  0x7f   : > { %v257_v46 = vadd.f32 %v256_v41, %v1239_v40 }
  0x80   : > { %725 = vmatpush3.bf16.msra.mxu0 %v724_v35 }
  0x81   : > { %726 = vmatprep.subr.bf16.mxu0 %v973_v0  ;;  %v258_v48 = vadd.f32 %v257_v46, %v1243_v43 }
  0x83   : > { %v259_v51 = vadd.f32 %v258_v48, %v1248_v47 }
  0x84   : > { %728 = vmatpush3.bf16.msra.mxu0 %v727_v42 }
  0x85   : > { %729 = vmatprep.subr.bf16.mxu0 %v973_v0  ;;  %v260_v53 = vadd.f32 %v259_v51, %v1252_v50  ;;  %v1281_v0 = vld [vmem:[%s1183_s28 + $0xa0] sm:$0xff] }
  0x87   : > { %v261_v55 = vadd.f32 %v260_v53, %v1257_v52 }
  0x88   : > { %731 = vmatpush3.bf16.msra.mxu0 %v730_v49 }
  0x89   : > { %v262_v57 = vadd.f32 %v261_v55, %v1261_v54 }
  0x8b   : > { %v263_v59 = vadd.f32 %v262_v57, %v1265_v56 }
  0x8d   : > { %v264_v61 = vadd.f32 %v263_v59, %v1269_v58 }
  0x8f   : > { %v265_v63 = vadd.f32 %v264_v61, %v1273_v60  ;;  %v454_v61 = vlaneseq }
  0x91   : > { %v266_v1 = vadd.f32 %v265_v63, %v1277_v62  ;;  %v455_v63 = vshrl.u32 %v454_v61, 7 }
  0x93   : > { %v267_v3 = vadd.f32 %v266_v1, %v1281_v0  ;;  %v456_v1 = vsub.s32 0, %v455_v63 }
  0x95   : > { %v268_v5 = vadd.f32 %v267_v3, %v1285_v2 }
  0x97   : > { %v269_v7 = vadd.f32 %v268_v5, %v1289_v4 }
  0x99   : > { %v270_v9 = vadd.f32 %v269_v7, %v1293_v6 }
  0x9b   : > { %v271_v14 = vadd.f32 %v270_v9, %v1297_v8 }
  0x9d   : > { %v272_v17 = vadd.f32 %v271_v14, %v1301_v13 }
  0x9f   : > { %v273_v20 = vadd.f32 %v272_v17, %v1305_v16 }
  0xa1   : > { %v274_v23 = vadd.f32 %v273_v20, %v1309_v18 }
  0xa3   : > { %v275_v25 = vadd.f32 %v274_v23, %v1313_v21 }
  0xa5   : > { %v276_v28 = vadd.f32 %v275_v25, %v1317_v24 }
  0xa7   : > { %v277_v31 = vadd.f32 %v276_v28, %v1321_v27 }
  0xa9   : > { %v278_v32 = vadd.f32 %v277_v31, %v1325_v30 }
  0xab   : > { %v279_v34 = vrot.slane %v278_v32, 4 }
  0xad   : > { %v280_v35 = vadd.f32 %v279_v34, %v278_v32 }
  0xaf   : > { %v281_v37 = vrot.slane %v280_v35, 2 }
  0xb1   : > { %v282_v38 = vadd.f32 %v281_v37, %v280_v35 }
  0xb3   : > { %v283_v39 = vrot.slane %v282_v38, 1 }
  0xb5   : > { %v284_v41 = vadd.f32 %v283_v39, %v282_v38 }
  0xb7   : > { %v285_v42 = vmul.f32 0.00390625, %v284_v41 }
  0xb9   : > { %701 = vmatmul.mubr.f32.vlgmr.msra.gmra.mrb[0].mxu0 %v285_v42 }
 0x18c   : > { %v368_v45 = vpop.f32.mrb[0].mxu0 }
 0x18d   : > { %v372_v46 = vmax.f32 %v368_v45, 0.0  ;;  %v702_v48 = vpop.f32.mrb[1].mxu0 }
 0x18f   : > { %706 = vmatmul.mubr.msk.f32.vlgmr.msra.gmra.mrb[0].mxu1 %vm374_vm1, %v372_v46 }
 0x262   : > { %v444_v49 = vpop.f32.mrb[0].mxu1 }
 0x263   : > { %v448_v51 = vsub.f32 0.0, %v444_v49  ;;  %v707_v53 = vpop.f32.mrb[1].mxu1 }
 0x265   : > { %v449_v55 = vmul.f32 1.442695, %v448_v51 }
 0x267   : > { %806 = vpow2.f32 %v449_v55 }
 0x271   : > { %v807_v57 = vpop.eup %806 }
 0x272   : > { %v451_v59 = vadd.f32 1.0, %v807_v57 }
 0x274   : > { %808 = vrcp.f32 %v451_v59 }
 0x27e   : > { %v809_v3 = vpop.eup %808 }
 0x27f   : > { %v457_v5 = vrot.slane %v809_v3, %v456_v1 }
 0x281   : > { %v458_v7 = vmul.f32 %v457_v5, %v1196_v10  ;;  %v459_v9 = vmul.f32 %v457_v5, %v1199_v11  ;;  %v460_v14 = vmul.f32 %v457_v5, %v1202_v12  ;;  %v461_v17 = vmul.f32 %v457_v5, %v1207_v15 }
 0x282   : > { %v462_v20 = vmul.f32 %v457_v5, %v1212_v19  ;;  %v463_v23 = vmul.f32 %v457_v5, %v1216_v22  ;;  %v464_v25 = vmul.f32 %v457_v5, %v1221_v26  ;;  %v465_v28 = vmul.f32 %v457_v5, %v1225_v29 }
 0x283   : > { %v466_v31 = vmul.f32 %v457_v5, %v1230_v33  ;;  %v467_v32 = vmul.f32 %v457_v5, %v1234_v36  ;;  %v468_v10 = vmul.f32 %v457_v5, %v1239_v40  ;;  %v469_v11 = vmul.f32 %v457_v5, %v1243_v43  ;;  %490 = vst [vmem:[%s1343_s18] sm:$0xff] %v458_v7 }
 0x284   : > { %491 = vst [vmem:[%s1343_s18 + $0x8] sm:$0xff] %v459_v9  ;;  %492 = vst [vmem:[%s1343_s18 + $0x10] sm:$0xff] %v460_v14  ;;  %v470_v12 = vmul.f32 %v457_v5, %v1248_v47  ;;  %v471_v15 = vmul.f32 %v457_v5, %v1252_v50  ;;  %v472_v19 = vmul.f32 %v457_v5, %v1257_v52 }
 0x285   : > { %493 = vst [vmem:[%s1343_s18 + $0x18] sm:$0xff] %v461_v17  ;;  %v473_v22 = vmul.f32 %v457_v5, %v1261_v54  ;;  %494 = vst [vmem:[%s1343_s18 + $0x20] sm:$0xff] %v462_v20  ;;  %v474_v26 = vmul.f32 %v457_v5, %v1265_v56  ;;  %v475_v29 = vmul.f32 %v457_v5, %v1269_v58 }
 0x286   : > { %495 = vst [vmem:[%s1343_s18 + $0x28] sm:$0xff] %v463_v23  ;;  %496 = vst [vmem:[%s1343_s18 + $0x30] sm:$0xff] %v464_v25  ;;  %v476_v33 = vmul.f32 %v457_v5, %v1273_v60  ;;  %v477_v36 = vmul.f32 %v457_v5, %v1277_v62  ;;  %v478_v40 = vmul.f32 %v457_v5, %v1281_v0 }
 0x287   : > { %497 = vst [vmem:[%s1343_s18 + $0x38] sm:$0xff] %v465_v28  ;;  %498 = vst [vmem:[%s1343_s18 + $0x40] sm:$0xff] %v466_v31  ;;  %v479_v43 = vmul.f32 %v457_v5, %v1285_v2  ;;  %v480_v47 = vmul.f32 %v457_v5, %v1289_v4  ;;  %v481_v50 = vmul.f32 %v457_v5, %v1293_v6 }
 0x288   : > { %499 = vst [vmem:[%s1343_s18 + $0x48] sm:$0xff] %v467_v32  ;;  %500 = vst [vmem:[%s1343_s18 + $0x50] sm:$0xff] %v468_v10  ;;  %v482_v52 = vmul.f32 %v457_v5, %v1297_v8  ;;  %v483_v54 = vmul.f32 %v457_v5, %v1301_v13  ;;  %v484_v56 = vmul.f32 %v457_v5, %v1305_v16 }
 0x289   : > { %501 = vst [vmem:[%s1343_s18 + $0x58] sm:$0xff] %v469_v11  ;;  %502 = vst [vmem:[%s1343_s18 + $0x60] sm:$0xff] %v470_v12  ;;  %v485_v58 = vmul.f32 %v457_v5, %v1309_v18  ;;  %v486_v60 = vmul.f32 %v457_v5, %v1313_v21  ;;  %v487_v62 = vmul.f32 %v457_v5, %v1317_v24 }
 0x28a   : > { %503 = vst [vmem:[%s1343_s18 + $0x68] sm:$0xff] %v471_v15  ;;  %504 = vst [vmem:[%s1343_s18 + $0x70] sm:$0xff] %v472_v19  ;;  %v488_v0 = vmul.f32 %v457_v5, %v1321_v27  ;;  %v489_v2 = vmul.f32 %v457_v5, %v1325_v30 }
 0x28b   : > { %505 = vst [vmem:[%s1343_s18 + $0x78] sm:$0xff] %v473_v22  ;;  %506 = vst [vmem:[%s1343_s18 + $0x80] sm:$0xff] %v474_v26 }
 0x28c   : > { %507 = vst [vmem:[%s1343_s18 + $0x88] sm:$0xff] %v475_v29  ;;  %508 = vst [vmem:[%s1343_s18 + $0x90] sm:$0xff] %v476_v33 }
 0x28d   : > { %509 = vst [vmem:[%s1343_s18 + $0x98] sm:$0xff] %v477_v36  ;;  %510 = vst [vmem:[%s1343_s18 + $0xa0] sm:$0xff] %v478_v40 }
 0x28e   : > { %511 = vst [vmem:[%s1343_s18 + $0xa8] sm:$0xff] %v479_v43  ;;  %512 = vst [vmem:[%s1343_s18 + $0xb0] sm:$0xff] %v480_v47 }
 0x28f   : > { %513 = vst [vmem:[%s1343_s18 + $0xb8] sm:$0xff] %v481_v50  ;;  %514 = vst [vmem:[%s1343_s18 + $0xc0] sm:$0xff] %v482_v52 }
 0x290   : > { %515 = vst [vmem:[%s1343_s18 + $0xc8] sm:$0xff] %v483_v54  ;;  %516 = vst [vmem:[%s1343_s18 + $0xd0] sm:$0xff] %v484_v56 }
 0x291   : > { %517 = vst [vmem:[%s1343_s18 + $0xd8] sm:$0xff] %v485_v58  ;;  %518 = vst [vmem:[%s1343_s18 + $0xe0] sm:$0xff] %v486_v60 }
 0x292   : > { %519 = vst [vmem:[%s1343_s18 + $0xe8] sm:$0xff] %v487_v62  ;;  %520 = vst [vmem:[%s1343_s18 + $0xf0] sm:$0xff] %v488_v0 }
 0x293   : > { %521 = vst [vmem:[%s1343_s18 + $0xf8] sm:$0xff] %v489_v2 }
 0x294   : > { %909 = shalt.err (!%p906_p1)
}
 0x295   : > { %s910_s10 = scalar_lea.hbm %s1386_s24, 4096  ;;  %s914_s26 = scalar_lea.hbm %s1451_s3, 8192 }
 0x296   : > { %p911_p13 = scmp.ne.s32.totalorder %s1386_s24, %s910_s10  ;;  %p915_p4 = scmp.lt.u32.totalorder %s1386_s24, %s1451_s3 }
 0x297   : > { %p916_p5 = scmp.lt.u32.totalorder %s914_s26, %s910_s10  ;;  %p918_p11 = scmp.lt.u32.totalorder %s910_s10, %s1386_s24 }
 0x298   : > { %p912_p6 = pnand %p911_p13, %p1465_p0 }
 0x299   : > { %p917_p8 = por %p916_p5, %p915_p4 }
 0x29a   : > { %p913_p10 = pneg %p912_p6 }
 0x29b   : > { %p919_p2 = por %p918_p11, %p917_p8 }
 0x29d   : > { %p920_p3 = pnand %p919_p2, %p913_p10 }
 0x29f   : > { %923 = shalt.err (!%p920_p3)
}
 0x2a0   : > { %s977_s28 = smov 128   ;;  %s978_s18 = smov 8  }
 0x2a1   : > { %742 = dma.vmem_to_hbm [thread:$0]  (%p1465_p0), %s1388_s7, 4096, %s1386_s24, %s523_s27, %s977_s28, %s977_s28, %s978_s18  }
 0x2a2 PF: > { %s551_s20 = sand.u32 1, %s954_s12   ;;  %p1466_p7 = scmp.ne.s32.totalorder %s1456_s19, 0 }
 0x2a3   : > { %p1467_p9 = scmp.ge.s32.totalorder %s966_s15, 2  ;;  %s552_s16 = scalar_lea.sflag [#allocation4], %s551_s20 }
 0x2a5   : > { %p756_p12 = pnand %p1467_p9, %p1466_p7 }
 0x2a7   : > { %949 = dma.done.wait (!%p756_p12), %s552_s16, 4096  }
 0x2a8   : > { %951 = vsyncadd (!%p756_p12), %s552_s16, 4294963200  ;;  %p17_p1 = scmp.ge.s32.totalorder %s1112_s4, 4   ;;  %s1468_s12 = smov %s958_s13 }
 0x2a9   : > { %s1469_s13 = smov %s962_s14  ;;  %s1470_s14 = smov %s1128_s9 }
 0x2aa   : > { %s1471_s15 = smov %s1112_s4  ;;  %19 = sbr.rel (!%p17_p1) target bundleno = 6 (0x6), region = 85 }
 0x2b1   :  { %557 = vsyncpa [#allocation3], 1 }
 0x2b2   :  { %559 = vsyncpa [#allocation3 + $0x1], 1 }
 0x2b3   :  { %560 = vsyncpa [#allocation6], 1 }
 0x2b4   :  { %561 = vsyncpa [#allocation4], 1 }
 0x2b5   :  { %563 = vsyncpa [#allocation4 + $0x1], 1 }

</bundles_post_ra>
